<compile_context>
chip_gen: v5e
topology: v5e:2x2
jax: 0.10.0
libtpu: 0.0.40
codegen_flags: <defaults>
</compile_context>

<pallas_src>
import functools

import jax
import jax.numpy as jnp
from jax.experimental import pallas as pl
from jax.experimental.pallas import tpu as pltpu

ALPHA = 1.0


def _vmem_capacity_bytes():
    try:
        info = pltpu.get_tpu_info()
        cap = getattr(info, "vmem_capacity_bytes", None)
        if cap:
            return int(cap)
    except Exception:
        pass
    return 64 << 20  # conservative floor (v7x per-TC VMEM)


def _pick_tiles(BJ, W, H, hm_itemsize, vmem_cap):
    """Pick (TB, TW, masked): TB rows of (H, TW) logit slabs per grid step."""
    # VMEM bytes per (bj, w) lane-column across all double-buffered inputs:
    # surface_maps column (H * itemsize) + four f32 aux values, x2 buffers.
    col_bytes = 2 * (H * hm_itemsize + 4 * 4)
    vmem_budget = max(col_bytes * 128, min((vmem_cap * 3) // 4, 96 << 20))
    max_cols = max(128, vmem_budget // col_bytes)
    # ~8 MiB logit slab per grid step keeps the DMA pipeline full on all gens.
    pref_cols = max(128, (8 << 20) // max(H * hm_itemsize, 1))
    cols = int(min(max_cols, pref_cols))

    if W <= cols:
        tw = W                                     # full W on the lane axis
        tb_cap = max(1, min(BJ, cols // max(W, 1)))
        tb = 1
        for d in range(tb_cap, 0, -1):             # largest exact divisor of BJ
            if BJ % d == 0:
                tb = d
                break
        masked = False
        if 2 * tb < tb_cap:                        # poor divisor: take the big
            tb = tb_cap                            # tile and mask the boundary
            masked = (BJ % tb) != 0
    else:
        tb = 1
        tw_cap = max(128, (cols // 128) * 128)     # lane tiles: 128 multiples
        tw = 0
        for t in range(tw_cap, 127, -128):         # largest 128-mult divisor
            if W % t == 0:
                tw = t
                break
        masked = False
        if tw == 0 or 2 * tw < tw_cap:
            tw = tw_cap
            masked = (W % tw) != 0
    return tb, tw, masked


def _summary_loss_kernel(hm_ref, wt_ref, fs_ref, gt_ref, tg_ref,
                         ce_ref, l1_ref, cls_ref,
                         *, bj_total, w_total, masked):
    i = pl.program_id(0)   # (B*J) tile index
    j = pl.program_id(1)   # W tile index

    @pl.when((i == 0) & (j == 0))
    def _init():
        ce_ref[...] = jnp.zeros_like(ce_ref)
        l1_ref[...] = jnp.zeros_like(l1_ref)
        # Hoisted class-index iota for the one-hot target gather.
        cls_ref[...] = jax.lax.broadcasted_iota(jnp.int32, cls_ref.shape, 1)

    tb, h, tw = hm_ref.shape
    wt = wt_ref[...]                               # (tb, 1, tw) f32
    hm = hm_ref[...].astype(jnp.float32)           # upcast after the DMA
    logits = hm * wt                               # weight scales the logits

    if masked:
        # Boundary blocks: mask rows/lanes past the logical extents and clamp
        # their logits so exp() of garbage cannot poison the reduction.
        rows_left = bj_total - i * tb
        lanes_left = w_total - j * tw
        row_ids = jax.lax.broadcasted_iota(jnp.int32, (tb, 1, tw), 0)
        lane_ids = jax.lax.broadcasted_iota(jnp.int32, (tb, 1, tw), 2)
        valid = (row_ids < rows_left) & (lane_ids < lanes_left)
        logits = jnp.where(valid, logits, 0.0)
        maskf = valid.astype(jnp.float32)

    # ---- CrossEntropy over the class (H / sublane) axis --------------------
    m = jnp.max(logits, axis=1, keepdims=True)                # (tb, 1, tw)
    e = jnp.exp(logits - m)                                   # 1 exp / element
    # NOTE: on v6e/v7x, casting (logits - m) to bf16 before exp doubles EUP
    # throughput if profiling shows the EUP slot binding (not valid on v5e).
    lse = jnp.log(jnp.sum(e, axis=1, keepdims=True)) + m      # (tb, 1, tw)
    z_t = jnp.sum(jnp.where(cls_ref[...] == tg_ref[...], logits, 0.0),
                  axis=1, keepdims=True)                       # (tb, 1, tw)
    ce = lse - z_t
    if masked:
        ce = ce * maskf

    # ---- SmoothL1 on the regressed surfaces (beta = 1) ----------------------
    d = fs_ref[...] * wt - gt_ref[...]
    if masked:
        d = jnp.where(valid, d, 0.0)               # -> sl1 = 0 on masked lanes
    ad = jnp.abs(d)
    sl1 = jnp.where(ad < 1.0, 0.5 * d * d, ad - 0.5)

    ce_ref[...] += jnp.sum(ce, axis=0, keepdims=True)          # (1, 1, tw)
    l1_ref[...] += jnp.sum(sl1, axis=0, keepdims=True)


def summary_loss(surface_maps, final_surfaces, bds_int, bds, weight,
                 alpha=ALPHA, tiles=None, interpret=False):
    """surface_maps: (B, J, H, W); final_surfaces/bds_int/bds/weight: (B, J, W)."""
    B, J, H, W = surface_maps.shape
    BJ, L = B * J, B * J * W

    # Free reshapes only -- the dominant tensor keeps its native layout/dtype.
    hm = surface_maps.reshape(BJ, H, W)
    wt = weight.reshape(BJ, 1, W).astype(jnp.float32)
    gt = bds.reshape(BJ, 1, W).astype(jnp.float32)
    fs = final_surfaces.reshape(BJ, 1, W).astype(jnp.float32)
    tg = bds_int.reshape(BJ, 1, W).astype(jnp.int32)

    itemsize = surface_maps.dtype.itemsize
    vmem_cap = _vmem_capacity_bytes()
    if tiles is None:
        TB, TW, masked = _pick_tiles(BJ, W, H, itemsize, vmem_cap)
    else:
        TB, TW = tiles
        masked = (BJ % TB != 0) or (W % TW != 0)
    grid = (pl.cdiv(BJ, TB), pl.cdiv(W, TW))

    # double-buffered inputs + iota scratch + accumulators, with headroom
    usage = 2 * (H * itemsize + 16) * TB * TW + 4 * H * TW + 8 * TW
    vmem_limit = int(min(vmem_cap - (2 << 20),
                         max(32 << 20, usage + (8 << 20))))

    kernel = functools.partial(_summary_loss_kernel,
                               bj_total=BJ, w_total=W, masked=masked)

    ce_part, l1_part = pl.pallas_call(
        kernel,
        out_shape=(jax.ShapeDtypeStruct((1, 1, TW), jnp.float32),
                   jax.ShapeDtypeStruct((1, 1, TW), jnp.float32)),
        grid=grid,
        in_specs=[
            pl.BlockSpec((TB, H, TW), lambda i, j: (i, 0, j)),
            pl.BlockSpec((TB, 1, TW), lambda i, j: (i, 0, j)),
            pl.BlockSpec((TB, 1, TW), lambda i, j: (i, 0, j)),
            pl.BlockSpec((TB, 1, TW), lambda i, j: (i, 0, j)),
            pl.BlockSpec((TB, 1, TW), lambda i, j: (i, 0, j)),
        ],
        out_specs=(
            pl.BlockSpec((1, 1, TW), lambda i, j: (0, 0, 0)),
            pl.BlockSpec((1, 1, TW), lambda i, j: (0, 0, 0)),
        ),
        scratch_shapes=[pltpu.VMEM((1, H, TW), jnp.int32)],
        compiler_params=pltpu.CompilerParams(
            # Both axes feed one resident accumulator block -> "arbitrary".
            dimension_semantics=("arbitrary", "arbitrary"),
            vmem_limit_bytes=vmem_limit,
        ),
        interpret=interpret,
    )(hm, wt, fs, gt, tg)

    n = jnp.float32(L)
    l_ce = jnp.sum(ce_part) / n        # CrossEntropyLoss, reduction='mean'
    l_l1 = jnp.sum(l1_part) / n        # SmoothL1Loss,    reduction='mean'
    loss = alpha * l_ce + l_l1
    return loss, l_ce, l_l1


def _reference(surface_maps, final_surfaces, bds_int, bds, weight, alpha=ALPHA):
    """Pure-JAX transcription of SummaryLoss.forward (CELoss + SmoothL1)."""
    sm = surface_maps.astype(jnp.float32)
    w = weight.astype(jnp.float32)
    logits = sm * w[:, :, None, :]
    lse = jax.scipy.special.logsumexp(logits, axis=2)                       # (B,J,W)
    z_t = jnp.take_along_axis(logits, bds_int[:, :, None, :], axis=2)[:, :, 0, :]
    l_ce = jnp.mean(lse - z_t)

    d = final_surfaces.astype(jnp.float32) * w - bds.astype(jnp.float32)
    ad = jnp.abs(d)
    sl1 = jnp.where(ad < 1.0, 0.5 * d * d, ad - 0.5)
    l_l1 = jnp.mean(sl1)
    return alpha * l_ce + l_l1, l_ce, l_l1


if __name__ == "__main__":
    def _run_case(B, J, H, W, dtype, tiles=None):
        key = jax.random.PRNGKey(0)
        k1, k2, k3, k4, k5 = jax.random.split(key, 5)
        surface_maps = jax.random.normal(k1, (B, J, H, W),
                                         dtype=jnp.float32).astype(dtype)
        final_surfaces = jax.random.uniform(k2, (B, J, W), dtype=jnp.float32) * 2.0
        bds = jax.random.uniform(k3, (B, J, W), dtype=jnp.float32) * 2.0
        bds_int = jax.random.randint(k4, (B, J, W), 0, H, dtype=jnp.int32)
        weight = jax.random.uniform(k5, (B, J, W), dtype=jnp.float32)

        out = jax.block_until_ready(
            summary_loss(surface_maps, final_surfaces, bds_int, bds, weight,
                         tiles=tiles))
        ref = _reference(surface_maps, final_surfaces, bds_int, bds, weight)
        for got, want in zip(out, ref):
            assert jnp.allclose(got, want, rtol=1e-4, atol=1e-5), (got, want)

    # 1) Small case, native layout, lane dim = full W (< 128), single step.
    _run_case(B=2, J=4, H=16, W=16, dtype=jnp.float32)
    # 2) Lane-dense case with bf16 surface_maps on the HBM wire.
    _run_case(B=2, J=4, H=16, W=128, dtype=jnp.bfloat16)
    # 3) Forced smaller tiles -> multi-step resident accumulation (exact tiles).
    _run_case(B=2, J=4, H=16, W=128, dtype=jnp.float32, tiles=(2, 128))

    print("KERNEL_OK")
</pallas_src>

<mosaic_0001>
module attributes {stable_mosaic.version = 11 : i64} {
  func.func @_summary_loss_kernel(%arg0: i32, %arg1: i32, %arg2: memref<8x16x16xf32, #tpu.memory_space<vmem>>, %arg3: memref<8x1x16xf32, #tpu.memory_space<vmem>>, %arg4: memref<8x1x16xf32, #tpu.memory_space<vmem>>, %arg5: memref<8x1x16xf32, #tpu.memory_space<vmem>>, %arg6: memref<8x1x16xi32, #tpu.memory_space<vmem>>, %arg7: memref<1x1x16xf32, #tpu.memory_space<vmem>>, %arg8: memref<1x1x16xf32, #tpu.memory_space<vmem>>, %arg9: memref<1x16x16xi32, #tpu.memory_space<vmem>>) attributes {dimension_semantics = [#tpu.dimension_semantics<arbitrary>, #tpu.dimension_semantics<arbitrary>], iteration_bounds = array<i64: 1, 1>, scalar_prefetch = 0 : i64, scratch_operands = 1 : i64, tpu.core_type = #tpu.core_type<tc>, window_params = [{transform_indices = @transform_0, window_bounds = array<i64: 8, 16, 16>}, {transform_indices = @transform_1, window_bounds = array<i64: 8, 1, 16>}, {transform_indices = @transform_2, window_bounds = array<i64: 8, 1, 16>}, {transform_indices = @transform_3, window_bounds = array<i64: 8, 1, 16>}, {transform_indices = @transform_4, window_bounds = array<i64: 8, 1, 16>}, {pipeline_mode = #tpu.pipeline_mode<synchronous>, transform_indices = @transform_5, window_bounds = array<i64: 1, 1, 16>}, {pipeline_mode = #tpu.pipeline_mode<synchronous>, transform_indices = @transform_6, window_bounds = array<i64: 1, 1, 16>}]} {
    %c0_i32 = arith.constant 0 : i32
    %0 = arith.cmpi eq, %arg0, %c0_i32 : i32
    %c0_i32_0 = arith.constant 0 : i32
    %1 = arith.cmpi eq, %arg1, %c0_i32_0 : i32
    %2 = arith.andi %0, %1 : i1
    %3 = arith.extui %2 : i1 to i32
    %c0_i32_1 = arith.constant 0 : i32
    %4 = arith.cmpi ne, %3, %c0_i32_1 : i32
    scf.if %4 {
      %cst_39 = arith.constant 0.000000e+00 : f32
      %51 = vector.broadcast %cst_39 : f32 to vector<1x1x16xf32>
      %c0_40 = arith.constant 0 : index
      %c0_41 = arith.constant 0 : index
      %c0_42 = arith.constant 0 : index
      %52 = vector.load %arg7[%c0_40, %c0_41, %c0_42] : memref<1x1x16xf32, #tpu.memory_space<vmem>>, vector<1x1x16xf32>
      tpu.vector_store %arg7[%c0_40, %c0_41, %c0_42], %51 {strides = array<i32>} : memref<1x1x16xf32, #tpu.memory_space<vmem>>, vector<1x1x16xf32>,
      %cst_43 = arith.constant 0.000000e+00 : f32
      %53 = vector.broadcast %cst_43 : f32 to vector<1x1x16xf32>
      %c0_44 = arith.constant 0 : index
      %c0_45 = arith.constant 0 : index
      %c0_46 = arith.constant 0 : index
      %54 = vector.load %arg8[%c0_44, %c0_45, %c0_46] : memref<1x1x16xf32, #tpu.memory_space<vmem>>, vector<1x1x16xf32>
      tpu.vector_store %arg8[%c0_44, %c0_45, %c0_46], %53 {strides = array<i32>} : memref<1x1x16xf32, #tpu.memory_space<vmem>>, vector<1x1x16xf32>,
      %55 = tpu.iota {dimensions = array<i32: 1>} : vector<1x16x16xi32>
      %c0_47 = arith.constant 0 : index
      %c0_48 = arith.constant 0 : index
      %c0_49 = arith.constant 0 : index
      %56 = vector.load %arg9[%c0_47, %c0_48, %c0_49] : memref<1x16x16xi32, #tpu.memory_space<vmem>>, vector<1x16x16xi32>
      tpu.vector_store %arg9[%c0_47, %c0_48, %c0_49], %55 {strides = array<i32>} : memref<1x16x16xi32, #tpu.memory_space<vmem>>, vector<1x16x16xi32>,
    } else {
    }
    %c0 = arith.constant 0 : index
    %c0_2 = arith.constant 0 : index
    %c0_3 = arith.constant 0 : index
    %5 = vector.load %arg3[%c0, %c0_2, %c0_3] : memref<8x1x16xf32, #tpu.memory_space<vmem>>, vector<8x1x16xf32>
    %c0_4 = arith.constant 0 : index
    %c0_5 = arith.constant 0 : index
    %c0_6 = arith.constant 0 : index
    %6 = vector.load %arg2[%c0_4, %c0_5, %c0_6] : memref<8x16x16xf32, #tpu.memory_space<vmem>>, vector<8x16x16xf32>
    %7 = vector.broadcast %5 : vector<8x1x16xf32> to vector<8x16x16xf32>
    %8 = arith.mulf %6, %7 : vector<8x16x16xf32>
    %cst = arith.constant dense<0xFF800000> : vector<8x16xf32>
    %9 = vector.multi_reduction <maximumf>, %8, %cst [1] : vector<8x16x16xf32> to vector<8x16xf32>
    %10 = vector.shape_cast %9 : vector<8x16xf32> to vector<8x1x16xf32>
    %11 = vector.broadcast %10 : vector<8x1x16xf32> to vector<8x16x16xf32>
    %12 = arith.subf %8, %11 : vector<8x16x16xf32>
    %13 = math.exp %12 : vector<8x16x16xf32>
    %cst_7 = arith.constant dense<0.000000e+00> : vector<8x16xf32>
    %14 = vector.multi_reduction <add>, %13, %cst_7 [1] : vector<8x16x16xf32> to vector<8x16xf32>
    %15 = vector.shape_cast %14 : vector<8x16xf32> to vector<8x1x16xf32>
    %16 = math.log %15 : vector<8x1x16xf32>
    %17 = arith.addf %16, %10 : vector<8x1x16xf32>
    %c0_8 = arith.constant 0 : index
    %c0_9 = arith.constant 0 : index
    %c0_10 = arith.constant 0 : index
    %18 = vector.load %arg9[%c0_8, %c0_9, %c0_10] : memref<1x16x16xi32, #tpu.memory_space<vmem>>, vector<1x16x16xi32>
    %c0_11 = arith.constant 0 : index
    %c0_12 = arith.constant 0 : index
    %c0_13 = arith.constant 0 : index
    %19 = vector.load %arg6[%c0_11, %c0_12, %c0_13] : memref<8x1x16xi32, #tpu.memory_space<vmem>>, vector<8x1x16xi32>
    %20 = vector.broadcast %18 : vector<1x16x16xi32> to vector<8x16x16xi32>
    %21 = vector.broadcast %19 : vector<8x1x16xi32> to vector<8x16x16xi32>
    %22 = arith.cmpi eq, %20, %21 : vector<8x16x16xi32>
    %cst_14 = arith.constant 0.000000e+00 : f32
    %23 = vector.broadcast %cst_14 : f32 to vector<8x16x16xf32>
    %24 = arith.select %22, %8, %23 : vector<8x16x16xi1>, vector<8x16x16xf32>
    %cst_15 = arith.constant dense<0.000000e+00> : vector<8x16xf32>
    %25 = vector.multi_reduction <add>, %24, %cst_15 [1] : vector<8x16x16xf32> to vector<8x16xf32>
    %26 = vector.shape_cast %25 : vector<8x16xf32> to vector<8x1x16xf32>
    %27 = arith.subf %17, %26 : vector<8x1x16xf32>
    %c0_16 = arith.constant 0 : index
    %c0_17 = arith.constant 0 : index
    %c0_18 = arith.constant 0 : index
    %28 = vector.load %arg4[%c0_16, %c0_17, %c0_18] : memref<8x1x16xf32, #tpu.memory_space<vmem>>, vector<8x1x16xf32>
    %29 = arith.mulf %28, %5 : vector<8x1x16xf32>
    %c0_19 = arith.constant 0 : index
    %c0_20 = arith.constant 0 : index
    %c0_21 = arith.constant 0 : index
    %30 = vector.load %arg5[%c0_19, %c0_20, %c0_21] : memref<8x1x16xf32, #tpu.memory_space<vmem>>, vector<8x1x16xf32>
    %31 = arith.subf %29, %30 : vector<8x1x16xf32>
    %32 = math.absf %31 : vector<8x1x16xf32>
    %cst_22 = arith.constant 1.000000e+00 : f32
    %33 = vector.broadcast %cst_22 : f32 to vector<8x1x16xf32>
    %34 = arith.cmpf olt, %32, %33 : vector<8x1x16xf32>
    %cst_23 = arith.constant 5.000000e-01 : f32
    %35 = vector.broadcast %cst_23 : f32 to vector<8x1x16xf32>
    %36 = arith.mulf %35, %31 : vector<8x1x16xf32>
    %37 = arith.mulf %36, %31 : vector<8x1x16xf32>
    %cst_24 = arith.constant 5.000000e-01 : f32
    %38 = vector.broadcast %cst_24 : f32 to vector<8x1x16xf32>
    %39 = arith.subf %32, %38 : vector<8x1x16xf32>
    %40 = arith.select %34, %37, %39 : vector<8x1x16xi1>, vector<8x1x16xf32>
    %c0_25 = arith.constant 0 : index
    %c0_26 = arith.constant 0 : index
    %c0_27 = arith.constant 0 : index
    %41 = vector.load %arg7[%c0_25, %c0_26, %c0_27] : memref<1x1x16xf32, #tpu.memory_space<vmem>>, vector<1x1x16xf32>
    %cst_28 = arith.constant dense<0.000000e+00> : vector<1x16xf32>
    %42 = vector.multi_reduction <add>, %27, %cst_28 [0] : vector<8x1x16xf32> to vector<1x16xf32>
    %43 = vector.shape_cast %42 : vector<1x16xf32> to vector<1x1x16xf32>
    %44 = arith.addf %41, %43 : vector<1x1x16xf32>
    %c0_29 = arith.constant 0 : index
    %c0_30 = arith.constant 0 : index
    %c0_31 = arith.constant 0 : index
    %45 = vector.load %arg7[%c0_29, %c0_30, %c0_31] : memref<1x1x16xf32, #tpu.memory_space<vmem>>, vector<1x1x16xf32>
    tpu.vector_store %arg7[%c0_29, %c0_30, %c0_31], %44 {strides = array<i32>} : memref<1x1x16xf32, #tpu.memory_space<vmem>>, vector<1x1x16xf32>,
    %c0_32 = arith.constant 0 : index
    %c0_33 = arith.constant 0 : index
    %c0_34 = arith.constant 0 : index
    %46 = vector.load %arg8[%c0_32, %c0_33, %c0_34] : memref<1x1x16xf32, #tpu.memory_space<vmem>>, vector<1x1x16xf32>
    %cst_35 = arith.constant dense<0.000000e+00> : vector<1x16xf32>
    %47 = vector.multi_reduction <add>, %40, %cst_35 [0] : vector<8x1x16xf32> to vector<1x16xf32>
    %48 = vector.shape_cast %47 : vector<1x16xf32> to vector<1x1x16xf32>
    %49 = arith.addf %46, %48 : vector<1x1x16xf32>
    %c0_36 = arith.constant 0 : index
    %c0_37 = arith.constant 0 : index
    %c0_38 = arith.constant 0 : index
    %50 = vector.load %arg8[%c0_36, %c0_37, %c0_38] : memref<1x1x16xf32, #tpu.memory_space<vmem>>, vector<1x1x16xf32>
    tpu.vector_store %arg8[%c0_36, %c0_37, %c0_38], %49 {strides = array<i32>} : memref<1x1x16xf32, #tpu.memory_space<vmem>>, vector<1x1x16xf32>,
    return
  }
  func.func @transform_0(%arg0: i32, %arg1: i32) -> (i32, i32, i32) {
    %c0_i32 = arith.constant 0 : i32
    %c0_i32_0 = arith.constant 0 : i32
    return %arg0, %c0_i32, %arg1 : i32, i32, i32
  }
  func.func @transform_1(%arg0: i32, %arg1: i32) -> (i32, i32, i32) {
    %c0_i32 = arith.constant 0 : i32
    %c0_i32_0 = arith.constant 0 : i32
    return %arg0, %c0_i32, %arg1 : i32, i32, i32
  }
  func.func @transform_2(%arg0: i32, %arg1: i32) -> (i32, i32, i32) {
    %c0_i32 = arith.constant 0 : i32
    %c0_i32_0 = arith.constant 0 : i32
    return %arg0, %c0_i32, %arg1 : i32, i32, i32
  }
  func.func @transform_3(%arg0: i32, %arg1: i32) -> (i32, i32, i32) {
    %c0_i32 = arith.constant 0 : i32
    %c0_i32_0 = arith.constant 0 : i32
    return %arg0, %c0_i32, %arg1 : i32, i32, i32
  }
  func.func @transform_4(%arg0: i32, %arg1: i32) -> (i32, i32, i32) {
    %c0_i32 = arith.constant 0 : i32
    %c0_i32_0 = arith.constant 0 : i32
    return %arg0, %c0_i32, %arg1 : i32, i32, i32
  }
  func.func @transform_5(%arg0: i32, %arg1: i32) -> (i32, i32, i32) {
    %c0_i32 = arith.constant 0 : i32
    %c0_i32_0 = arith.constant 0 : i32
    %c0_i32_1 = arith.constant 0 : i32
    %c0_i32_2 = arith.constant 0 : i32
    return %c0_i32, %c0_i32_0, %c0_i32_1 : i32, i32, i32
  }
  func.func @transform_6(%arg0: i32, %arg1: i32) -> (i32, i32, i32) {
    %c0_i32 = arith.constant 0 : i32
    %c0_i32_0 = arith.constant 0 : i32
    %c0_i32_1 = arith.constant 0 : i32
    %c0_i32_2 = arith.constant 0 : i32
    return %c0_i32, %c0_i32_0, %c0_i32_1 : i32, i32, i32
  }
}

</mosaic_0001>

<bundles_post_ra>
// kernel: tpu_custom_call.1
= control target key start
LH: loop header
LB: loop body
LE: loop exit
PB: predicated region body
PF: predicated region fallthrough
CT: control target
= control target key end

     0   :  { %12 = vsyncpa [#allocation4], 0  ;;  %s1381_s0 = inlined_call_operand.hbm [shape: f32[8,16,16], index: 0, kind: input, shape index: {}]   ;;  %s1382_s1 = inlined_call_operand.hbm [shape: f32[8,1,16], index: 1, kind: input, shape index: {}]   ;;  %s1383_s2 = inlined_call_operand.hbm [shape: f32[8,1,16], index: 2, kind: input, shape index: {}]   ;;  %s1384_s3 = inlined_call_operand.hbm [shape: f32[8,1,16], index: 3, kind: input, shape index: {}]   ;;  %s1385_s4 = inlined_call_operand.hbm [shape: s32[8,1,16], index: 4, kind: input, shape index: {}]   ;;  %s1386_s5 = inlined_call_operand.hbm [shape: f32[1,1,16], index: 5, kind: output, shape index: {0}]   ;;  %s1387_s6 = inlined_call_operand.hbm [shape: f32[1,1,16], index: 6, kind: output, shape index: {1}]  }
   0x1   :  { %13 = vsyncpa [#allocation7], 0 }
   0x2   :  { %14 = vsyncpa [#allocation10], 0 }
   0x3   :  { %15 = vsyncpa [#allocation5], 0  ;;  %s34_s23 = sshll.u32 %s1382_s1, 4  ;;  %s35_s23 = int_to_ptr.hbm [resolvable:$true] %s34_s23 }
   0x4   :  { %16 = vsyncpa [#allocation14], 0  ;;  %s942_s24 = smov [#allocation6]   ;;  %s60_s28 = sshll.u32 %s1384_s3, 4  ;;  %s61_s28 = int_to_ptr.hbm [resolvable:$true] %s60_s28 }
   0x5   :  { %s36_s25 = sshll.u32 %s942_s24, 4  ;;  %s943_s29 = smov 16   ;;  %s37_s25 = int_to_ptr.vmem [resolvable:$true] %s36_s25 }
   0x6   :  { %s944_s30 = smov 1   ;;  %s945_s7 = smov [#allocation9]  }
   0x7   :  { %42 = dma.hbm_to_vmem [thread:$0]  %s35_s23, 128, %s37_s25, [#allocation7], %s943_s29, %s943_s29, %s944_s30  }
   0x8   :  { %s62_s8 = sshll.u32 %s945_s7, 4  ;;  %s21_s10 = sshll.u32 %s1381_s0, 4  ;;  %s63_s8 = int_to_ptr.vmem [resolvable:$true] %s62_s8  ;;  %s22_s10 = int_to_ptr.hbm [resolvable:$true] %s21_s10 }
   0x9   :  { %68 = dma.hbm_to_vmem [thread:$0]  %s61_s28, 128, %s63_s8, [#allocation10], %s943_s29, %s943_s29, %s944_s30  }
   0xa   :  { %s946_s3 = smov [#allocation3]   ;;  %s47_s14 = sshll.u32 %s1383_s2, 4  ;;  %s48_s14 = int_to_ptr.hbm [resolvable:$true] %s47_s14 }
   0xb   :  { %s23_s11 = sshll.u32 %s946_s3, 4  ;;  %s947_s15 = smov 128   ;;  %s24_s11 = int_to_ptr.vmem [resolvable:$true] %s23_s11 }
   0xc   :  { %s948_s16 = smov 8   ;;  %s949_s17 = smov [#allocation8]  }
   0xd   :  { %29 = dma.hbm_to_vmem [thread:$0]  %s22_s10, 2048, %s24_s11, [#allocation4], %s947_s15, %s947_s15, %s948_s16  }
   0xe   :  { %s49_s18 = sshll.u32 %s949_s17, 4  ;;  %s73_s20 = sshll.u32 %s1385_s4, 4  ;;  %s50_s18 = int_to_ptr.vmem [resolvable:$true] %s49_s18  ;;  %s74_s20 = int_to_ptr.hbm [resolvable:$true] %s73_s20 }
   0xf   :  { %55 = dma.hbm_to_vmem [thread:$0]  %s48_s14, 128, %s50_s18, [#allocation7], %s943_s29, %s943_s29, %s944_s30  }
  0x10   :  { %s950_s21 = smov [#allocation11]  }
  0x11   :  { %s75_s22 = sshll.u32 %s950_s21, 4  ;;  %s76_s22 = int_to_ptr.vmem [resolvable:$true] %s75_s22 }
  0x12   :  { %81 = dma.hbm_to_vmem [thread:$0]  %s74_s20, 128, %s76_s22, [#allocation10], %s943_s29, %s943_s29, %s944_s30  }
  0x13   :  { %932 = dma.done.wait [#allocation4], 2048  }
  0x14   :  { %933 = vsyncadd [#allocation4], 4294965248 }
  0x15   :  { %934 = dma.done.wait [#allocation7], 256  }
  0x16   :  { %935 = vsyncadd [#allocation7], 4294967040 }
  0x17   :  { %936 = dma.done.wait [#allocation10], 256  }
  0x18   :  { %937 = vsyncadd [#allocation10], 4294967040  ;;  %v111_v0 = vlaneseq  ;;  %vm1388_vm0 = vcmask 122880   ;;  %v951_v1 = vmov 0.0   ;;  %vm114_vm1 = vcmask 130048   ;;  %v125_v4 = vld [vmem:[#allocation3] sm:$0xff] }
  0x19   :  { %109 = vst.msk [vmem:[#allocation12] sm:$0x1] %vm1388_vm0, %v951_v1  ;;  %v126_v5 = vld [vmem:[#allocation3 + $0x8] sm:$0xff]  ;;  %v127_v6 = vld [vmem:[#allocation3 + $0x10] sm:$0xff]  ;;  %v128_v7 = vld [vmem:[#allocation3 + $0x18] sm:$0xff]  ;;  %s952_s2 = smov [#allocation12]  }
  0x1a   :  { %v112_v2 = vshrl.u32 %v111_v0, 7  ;;  %110 = vst.msk [vmem:[#allocation13] sm:$0x1] %vm1388_vm0, %v951_v1  ;;  %v129_v8 = vld [vmem:[#allocation3 + $0x20] sm:$0xff]  ;;  %v130_v9 = vld [vmem:[#allocation3 + $0x28] sm:$0xff]  ;;  %v131_v10 = vld [vmem:[#allocation3 + $0x30] sm:$0xff] }
  0x1b   :  { %v132_v11 = vld [vmem:[#allocation3 + $0x38] sm:$0xff]  ;;  %v133_v12 = vld [vmem:[#allocation3 + $0x40] sm:$0xff]  ;;  %v134_v13 = vld [vmem:[#allocation3 + $0x48] sm:$0xff]  ;;  %s1325_s4 = sshll.u32 %s952_s2, 4  ;;  %s652_s25 = sshll.u32 %s1386_s5, 4  ;;  %s651_s4 = int_to_ptr.vmem [resolvable:$true] %s1325_s4  ;;  %s653_s25 = int_to_ptr.hbm [resolvable:$true] %s652_s25 }
  0x1c   :  { %115 = vst.msk [vmem:[#allocation2] sm:$0xff] %vm114_vm1, %v112_v2  ;;  %v113_v3 = vadd.s32 8, %v112_v2  ;;  %v135_v14 = vld [vmem:[#allocation3 + $0x50] sm:$0xff]  ;;  %v136_v15 = vld [vmem:[#allocation3 + $0x58] sm:$0xff]  ;;  %v137_v16 = vld [vmem:[#allocation3 + $0x60] sm:$0xff]  ;;  %s953_s5 = smov [#allocation13]  }
  0x1d   :  { %v138_v17 = vld [vmem:[#allocation3 + $0x68] sm:$0xff]  ;;  %v700_v18 = vld [vmem:[#allocation6] ss:$0 sm:$0xff]  ;;  %v139_v19 = vld [vmem:[#allocation3 + $0x70] sm:$0xff]  ;;  %s661_s26 = sshll.u32 %s953_s5, 4  ;;  %s663_s29 = sshll.u32 %s1387_s6, 4  ;;  %s662_s26 = int_to_ptr.vmem [resolvable:$true] %s661_s26  ;;  %s664_s29 = int_to_ptr.hbm [resolvable:$true] %s663_s29 }
  0x1e   :  { %116 = vst.msk [vmem:[#allocation2 + $0x8] sm:$0xff] %vm114_vm1, %v113_v3  ;;  %v140_v20 = vld [vmem:[#allocation3 + $0x78] sm:$0xff]  ;;  %v701_v21 = vld [vmem:[#allocation6 + $0x1] ss:$0 sm:$0xff]  ;;  %v702_v22 = vld [vmem:[#allocation6 + $0x2] ss:$0 sm:$0xff]  ;;  %v1020_v27 = vmul.f32 %v700_v18, %v125_v4  ;;  %v1022_v28 = vmul.f32 %v700_v18, %v126_v5 }
  0x1f   :  { %v703_v23 = vld [vmem:[#allocation6 + $0x3] ss:$0 sm:$0xff]  ;;  %v704_v24 = vld [vmem:[#allocation6 + $0x4] ss:$0 sm:$0xff]  ;;  %v705_v25 = vld [vmem:[#allocation6 + $0x5] ss:$0 sm:$0xff]  ;;  %v1024_v30 = vmul.f32 %v701_v21, %v127_v6  ;;  %v1026_v31 = vmul.f32 %v701_v21, %v128_v7  ;;  %v1028_v32 = vmul.f32 %v702_v22, %v129_v8  ;;  %v1030_v33 = vmul.f32 %v702_v22, %v130_v9 }
  0x20   :  { %v706_v26 = vld [vmem:[#allocation6 + $0x6] ss:$0 sm:$0xff]  ;;  %v707_v29 = vld [vmem:[#allocation6 + $0x7] ss:$0 sm:$0xff]  ;;  %v1032_v34 = vmul.f32 %v703_v23, %v131_v10  ;;  %v1034_v35 = vmul.f32 %v703_v23, %v132_v11  ;;  %v1036_v36 = vmul.f32 %v704_v24, %v133_v12  ;;  %v1038_v37 = vmul.f32 %v704_v24, %v134_v13 }
  0x21   :  { %v1040_v38 = vmul.f32 %v705_v25, %v135_v14  ;;  %v1042_v39 = vmul.f32 %v705_v25, %v136_v15  ;;  %v1044_v40 = vmul.f32 %v706_v26, %v137_v16  ;;  %v1046_v41 = vmul.f32 %v706_v26, %v138_v17 }
  0x22   :  { %v1048_v42 = vmul.f32 %v707_v29, %v139_v19  ;;  %v1050_v43 = vmul.f32 %v707_v29, %v140_v20  ;;  %v182_v44 = vsel %vm114_vm1, %v1020_v27, -inf  ;;  %v183_v45 = vsel %vm114_vm1, %v1022_v28, -inf }
  0x23   :  { %v184_v46 = vmax.f32 %v182_v44, %v183_v45  ;;  %v191_v47 = vsel %vm114_vm1, %v1024_v30, -inf  ;;  %v192_v48 = vsel %vm114_vm1, %v1026_v31, -inf  ;;  %v200_v49 = vsel %vm114_vm1, %v1028_v32, -inf }
  0x24   :  { %v193_v50 = vmax.f32 %v191_v47, %v192_v48  ;;  %v201_v51 = vsel %vm114_vm1, %v1030_v33, -inf  ;;  %v209_v52 = vsel %vm114_vm1, %v1032_v34, -inf  ;;  %v210_v53 = vsel %vm114_vm1, %v1034_v35, -inf }
  0x25   :  { %v185_v54 = vrot.slane %v184_v46, 4  ;;  %v202_v55 = vmax.f32 %v200_v49, %v201_v51  ;;  %v211_v56 = vmax.f32 %v209_v52, %v210_v53  ;;  %v218_v57 = vsel %vm114_vm1, %v1036_v36, -inf }
  0x26   :  { %v194_v58 = vrot.slane %v193_v50, 4  ;;  %v219_v59 = vsel %vm114_vm1, %v1038_v37, -inf  ;;  %v227_v60 = vsel %vm114_vm1, %v1040_v38, -inf  ;;  %v228_v61 = vsel %vm114_vm1, %v1042_v39, -inf }
  0x27   :  { %v186_v62 = vmax.f32 %v184_v46, %v185_v54  ;;  %v203_v63 = vrot.slane %v202_v55, 4  ;;  %v212_v0 = vrot.slane %v211_v56, 4  ;;  %v220_v1 = vmax.f32 %v218_v57, %v219_v59 }
  0x28   :  { %v195_v2 = vmax.f32 %v193_v50, %v194_v58  ;;  %v229_v3 = vmax.f32 %v227_v60, %v228_v61  ;;  %v236_v4 = vsel %vm114_vm1, %v1044_v40, -inf  ;;  %v237_v5 = vsel %vm114_vm1, %v1046_v41, -inf }
  0x29   :  { %v187_v6 = vrot.slane %v186_v62, 2  ;;  %v204_v7 = vmax.f32 %v202_v55, %v203_v63  ;;  %v213_v8 = vmax.f32 %v211_v56, %v212_v0  ;;  %v221_v9 = vrot.slane %v220_v1, 4 }
  0x2a   :  { %v196_v10 = vrot.slane %v195_v2, 2  ;;  %v230_v11 = vrot.slane %v229_v3, 4  ;;  %v238_v12 = vmax.f32 %v236_v4, %v237_v5  ;;  %v245_v13 = vsel %vm114_vm1, %v1048_v42, -inf }
  0x2b   :  { %v188_v14 = vmax.f32 %v186_v62, %v187_v6  ;;  %v205_v15 = vrot.slane %v204_v7, 2  ;;  %v214_v16 = vrot.slane %v213_v8, 2  ;;  %v222_v17 = vmax.f32 %v220_v1, %v221_v9 }
  0x2c   :  { %v197_v18 = vmax.f32 %v195_v2, %v196_v10  ;;  %v231_v19 = vmax.f32 %v229_v3, %v230_v11  ;;  %v239_v20 = vrot.slane %v238_v12, 4  ;;  %v246_v21 = vsel %vm114_vm1, %v1050_v43, -inf }
  0x2d   :  { %v189_v22 = vrot.slane %v188_v14, 1  ;;  %v206_v23 = vmax.f32 %v204_v7, %v205_v15  ;;  %v215_v24 = vmax.f32 %v213_v8, %v214_v16  ;;  %v223_v25 = vrot.slane %v222_v17, 2 }
  0x2e   :  { %v198_v26 = vrot.slane %v197_v18, 1  ;;  %v232_v29 = vrot.slane %v231_v19, 2  ;;  %v240_v44 = vmax.f32 %v238_v12, %v239_v20  ;;  %v247_v45 = vmax.f32 %v245_v13, %v246_v21 }
  0x2f   :  { %v1084_v46 = vmax.f32 %v188_v14, %v189_v22  ;;  %v207_v47 = vrot.slane %v206_v23, 1  ;;  %v216_v48 = vrot.slane %v215_v24, 1  ;;  %v224_v49 = vmax.f32 %v222_v17, %v223_v25 }
  0x30   :  { %v1086_v50 = vmax.f32 %v197_v18, %v198_v26  ;;  %v233_v51 = vmax.f32 %v231_v19, %v232_v29  ;;  %v241_v52 = vrot.slane %v240_v44, 2  ;;  %v248_v53 = vrot.slane %v247_v45, 4 }
  0x31   :  { %v1088_v54 = vmax.f32 %v206_v23, %v207_v47  ;;  %v225_v55 = vrot.slane %v224_v49, 1  ;;  %v1090_v59 = vmax.f32 %v215_v24, %v216_v48  ;;  %v254_v60 = vsub.f32 %v1020_v27, %v1084_v46 }
  0x32   :  { %v234_v56 = vrot.slane %v233_v51, 1  ;;  %v242_v57 = vmax.f32 %v240_v44, %v241_v52  ;;  %v249_v58 = vmax.f32 %v247_v45, %v248_v53  ;;  %v255_v61 = vsub.f32 %v1022_v28, %v1084_v46 }
  0x33   :  { %v256_v62 = vsub.f32 %v1024_v30, %v1086_v50  ;;  %v257_v0 = vsub.f32 %v1026_v31, %v1086_v50  ;;  %v1100_v1 = vmax.f32 %v224_v49, %v225_v55  ;;  %v258_v3 = vsub.f32 %v1028_v32, %v1088_v54 }
  0x34   :  { %v250_v63 = vrot.slane %v249_v58, 2  ;;  %v243_v2 = vrot.slane %v242_v57, 1  ;;  %v1104_v4 = vmax.f32 %v233_v51, %v234_v56  ;;  %v259_v6 = vsub.f32 %v1030_v33, %v1088_v54 }
  0x35   :  { %v260_v7 = vsub.f32 %v1032_v34, %v1090_v59  ;;  %v270_v8 = vmul.f32 1.442695, %v254_v60  ;;  %v272_v9 = vmul.f32 1.442695, %v255_v61  ;;  %v274_v10 = vmul.f32 1.442695, %v256_v62 }
  0x36   :  { %v251_v5 = vmax.f32 %v249_v58, %v250_v63  ;;  %v261_v12 = vsub.f32 %v1034_v35, %v1090_v59  ;;  %v276_v13 = vmul.f32 1.442695, %v257_v0  ;;  %v1112_v14 = vmax.f32 %v242_v57, %v243_v2  ;;  %v1134_v57 = vld [vmem:[#allocation11] ss:$0 sm:$0xff]  ;;  %v1136_v60 = vld [vmem:[#allocation2] sm:$0xff] }
  0x37   :  { %v262_v15 = vsub.f32 %v1036_v36, %v1100_v1  ;;  %716 = vpow2.f32 %v270_v8  ;;  %v278_v16 = vmul.f32 1.442695, %v258_v3  ;;  %v263_v17 = vsub.f32 %v1038_v37, %v1100_v1 }
  0x38   :  { %v252_v11 = vrot.slane %v251_v5, 1  ;;  %718 = vpow2.f32 %v272_v9  ;;  %v280_v18 = vmul.f32 1.442695, %v259_v6  ;;  %v264_v20 = vsub.f32 %v1040_v38, %v1104_v4 }
  0x39   :  { %720 = vpow2.f32 %v274_v10  ;;  %v282_v21 = vmul.f32 1.442695, %v260_v7  ;;  %v265_v22 = vsub.f32 %v1042_v39, %v1104_v4  ;;  %v284_v23 = vmul.f32 1.442695, %v261_v12  ;;  %v1140_v7 = vld [vmem:[#allocation2 + $0x8] sm:$0xff] }
  0x3a   :  { %v1118_v19 = vmax.f32 %v251_v5, %v252_v11  ;;  %722 = vpow2.f32 %v276_v13  ;;  %v266_v24 = vsub.f32 %v1044_v40, %v1112_v14  ;;  %v286_v25 = vmul.f32 1.442695, %v262_v15  ;;  %v1144_v13 = vld [vmem:[#allocation11 + $0x1] ss:$0 sm:$0xff] }
  0x3b   :  { %724 = vpow2.f32 %v278_v16  ;;  %v267_v26 = vsub.f32 %v1046_v41, %v1112_v14  ;;  %v288_v29 = vmul.f32 1.442695, %v263_v17  ;;  %v290_v48 = vmul.f32 1.442695, %v264_v20 }
  0x3c   :  { %726 = vpow2.f32 %v280_v18  ;;  %v268_v45 = vsub.f32 %v1048_v42, %v1118_v19  ;;  %v269_v47 = vsub.f32 %v1050_v43, %v1118_v19  ;;  %v292_v51 = vmul.f32 1.442695, %v265_v22 }
  0x3d   :  { %v717_v44 = vpop.eup %716  ;;  %728 = vpow2.f32 %v282_v21  ;;  %v294_v55 = vmul.f32 1.442695, %v266_v24  ;;  %v296_v61 = vmul.f32 1.442695, %v267_v26  ;;  %vm416_vm2 = vcmp.eq.s32.totalorder %v1136_v60, %v1134_v57 }
  0x3e   :  { %v719_v49 = vpop.eup %718  ;;  %730 = vpow2.f32 %v284_v23  ;;  %v302_v52 = vsel %vm114_vm1, %v717_v44, 0.0  ;;  %v298_v2 = vmul.f32 1.442695, %v268_v45  ;;  %v300_v3 = vmul.f32 1.442695, %v269_v47 }
  0x3f   :  { %v721_v53 = vpop.eup %720  ;;  %732 = vpow2.f32 %v286_v25  ;;  %v303_v56 = vsel %vm114_vm1, %v719_v49, 0.0  ;;  %v1150_v23 = vld [vmem:[#allocation11 + $0x2] ss:$0 sm:$0xff]  ;;  %vm417_vm3 = vcmp.eq.s32.totalorder %v1140_v7, %v1134_v57  ;;  %v1156_v49 = vld [vmem:[#allocation11 + $0x3] ss:$0 sm:$0xff]  ;;  %vm418_vm4 = vcmp.eq.s32.totalorder %v1136_v60, %v1144_v13 }
  0x40   :  { %v723_v58 = vpop.eup %722  ;;  %734 = vpow2.f32 %v288_v29  ;;  %v304_v62 = vadd.f32 %v303_v56, %v302_v52  ;;  %v311_v63 = vsel %vm114_vm1, %v721_v53, 0.0  ;;  %vm419_vm5 = vcmp.eq.s32.totalorder %v1140_v7, %v1144_v13 }
  0x41   :  { %v725_v0 = vpop.eup %724  ;;  %736 = vpow2.f32 %v290_v48  ;;  %v312_v5 = vsel %vm114_vm1, %v723_v58, 0.0  ;;  %vm420_vm6 = vcmp.eq.s32.totalorder %v1136_v60, %v1150_v23  ;;  %vm421_vm7 = vcmp.eq.s32.totalorder %v1140_v7, %v1150_v23 }
  0x42   :  { %v727_v6 = vpop.eup %726  ;;  %738 = vpow2.f32 %v292_v51  ;;  %v305_v8 = vrot.slane %v304_v62, 4  ;;  %v313_v9 = vadd.f32 %v312_v5, %v311_v63  ;;  %v320_v10 = vsel %vm114_vm1, %v725_v0, 0.0  ;;  %v1158_v51 = vld [vmem:[#allocation11 + $0x4] ss:$0 sm:$0xff] }
  0x43   :  { %v729_v11 = vpop.eup %728  ;;  %740 = vpow2.f32 %v294_v55  ;;  %v321_v12 = vsel %vm114_vm1, %v727_v6, 0.0  ;;  %v1178_v5 = vsel %vm416_vm2, %v1020_v27, 0.0  ;;  %vm422_vm8 = vcmp.eq.s32.totalorder %v1136_v60, %v1156_v49 }
  0x44   :  { %v731_v15 = vpop.eup %730  ;;  %742 = vpow2.f32 %v296_v61  ;;  %v306_v16 = vadd.f32 %v305_v8, %v304_v62  ;;  %v314_v17 = vrot.slane %v313_v9, 4  ;;  %v322_v18 = vadd.f32 %v321_v12, %v320_v10  ;;  %v1164_v61 = vld [vmem:[#allocation11 + $0x5] ss:$0 sm:$0xff] }
  0x45   :  { %v733_v20 = vpop.eup %732  ;;  %744 = vpow2.f32 %v298_v2  ;;  %v329_v21 = vsel %vm114_vm1, %v729_v11, 0.0  ;;  %v330_v22 = vsel %vm114_vm1, %v731_v15, 0.0  ;;  %vm423_vm9 = vcmp.eq.s32.totalorder %v1140_v7, %v1156_v49 }
  0x46   :  { %v735_v24 = vpop.eup %734  ;;  %746 = vpow2.f32 %v300_v3  ;;  %v307_v25 = vrot.slane %v306_v16, 2  ;;  %v315_v26 = vadd.f32 %v314_v17, %v313_v9  ;;  %v323_v29 = vrot.slane %v322_v18, 4  ;;  %v1168_v3 = vld [vmem:[#allocation11 + $0x6] ss:$0 sm:$0xff] }
  0x47   :  { %v737_v44 = vpop.eup %736  ;;  %v331_v45 = vadd.f32 %v330_v22, %v329_v21  ;;  %v338_v47 = vsel %vm114_vm1, %v733_v20, 0.0  ;;  %v339_v48 = vsel %vm114_vm1, %v735_v24, 0.0  ;;  %v1182_v20 = vld [vmem:[#allocation11 + $0x7] ss:$0 sm:$0xff]  ;;  %vm424_vm10 = vcmp.eq.s32.totalorder %v1136_v60, %v1158_v51 }
  0x48   :  { %v739_v52 = vpop.eup %738  ;;  %v308_v53 = vadd.f32 %v307_v25, %v306_v16  ;;  %v316_v55 = vrot.slane %v315_v26, 2  ;;  %v324_v56 = vadd.f32 %v323_v29, %v322_v18  ;;  %v340_v58 = vadd.f32 %v339_v48, %v338_v47 }
  0x49   :  { %v741_v62 = vpop.eup %740  ;;  %v332_v63 = vrot.slane %v331_v45, 4  ;;  %v347_v0 = vsel %vm114_vm1, %v737_v44, 0.0  ;;  %v348_v2 = vsel %vm114_vm1, %v739_v52, 0.0  ;;  %vm425_vm11 = vcmp.eq.s32.totalorder %v1140_v7, %v1158_v51 }
  0x4a   :  { %v743_v6 = vpop.eup %742  ;;  %v309_v8 = vrot.slane %v308_v53, 1  ;;  %v317_v9 = vadd.f32 %v316_v55, %v315_v26  ;;  %v325_v10 = vrot.slane %v324_v56, 2  ;;  %v341_v11 = vrot.slane %v340_v58, 4 }
  0x4b   :  { %v745_v12 = vpop.eup %744  ;;  %v333_v15 = vadd.f32 %v332_v63, %v331_v45  ;;  %v349_v16 = vadd.f32 %v348_v2, %v347_v0  ;;  %v356_v17 = vsel %vm114_vm1, %v741_v62, 0.0  ;;  %v357_v18 = vsel %vm114_vm1, %v743_v6, 0.0 }
  0x4c   :  { %v747_v27 = vpop.eup %746  ;;  %v310_v21 = vadd.f32 %v309_v8, %v308_v53  ;;  %v318_v22 = vrot.slane %v317_v9, 1  ;;  %v326_v24 = vadd.f32 %v325_v10, %v324_v56  ;;  %v342_v25 = vadd.f32 %v341_v11, %v340_v58 }
  0x4d   :  { %v334_v26 = vrot.slane %v333_v15, 2  ;;  %v350_v29 = vrot.slane %v349_v16, 4  ;;  %v358_v44 = vadd.f32 %v357_v18, %v356_v17  ;;  %v365_v45 = vsel %vm114_vm1, %v745_v12, 0.0 }
  0x4e   :  { %vm426_vm12 = vcmp.eq.s32.totalorder %v1136_v60, %v1164_v61  ;;  %vm427_vm13 = vcmp.eq.s32.totalorder %v1140_v7, %v1164_v61  ;;  %vm428_vm14 = vcmp.eq.s32.totalorder %v1136_v60, %v1168_v3  ;;  %v319_v47 = vadd.f32 %v318_v22, %v317_v9 }
  0x4f   :  { %v327_v48 = vrot.slane %v326_v24, 1  ;;  %v343_v52 = vrot.slane %v342_v25, 2  ;;  %v366_v53 = vsel %vm114_vm1, %v747_v27, 0.0  ;;  %v335_v55 = vadd.f32 %v334_v26, %v333_v15 }
  0x50   :  { %v351_v56 = vadd.f32 %v350_v29, %v349_v16  ;;  %v359_v58 = vrot.slane %v358_v44, 4  ;;  %v367_v62 = vadd.f32 %v366_v53, %v365_v45  ;;  %vm429_vm15 = vcmp.eq.s32.totalorder %v1140_v7, %v1168_v3 }
  0x51   :  { %vm430_vm2 = vcmp.eq.s32.totalorder %v1136_v60, %v1182_v20  ;;  %v328_v63 = vadd.f32 %v327_v48, %v326_v24  ;;  %v344_v0 = vadd.f32 %v343_v52, %v342_v25  ;;  %748 = vlog2.f32 %v310_v21 }
  0x52   :  { %v433_v2 = vsel %vm417_vm3, %v1022_v28, 0.0  ;;  %v336_v6 = vrot.slane %v335_v55, 1  ;;  %v352_v8 = vrot.slane %v351_v56, 2  ;;  %v360_v9 = vadd.f32 %v359_v58, %v358_v44 }
  0x53   :  { %v368_v10 = vrot.slane %v367_v62, 4  ;;  %vm431_vm0 = vcmp.eq.s32.totalorder %v1140_v7, %v1182_v20  ;;  %v345_v11 = vrot.slane %v344_v0, 1  ;;  %750 = vlog2.f32 %v319_v47 }
  0x54   :  { %v434_v12 = vsel %vm418_vm4, %v1024_v30, 0.0  ;;  %v435_v57 = vsel %vm419_vm5, %v1026_v31, 0.0  ;;  %v337_v28 = vadd.f32 %v336_v6, %v335_v55  ;;  %v353_v15 = vadd.f32 %v352_v8, %v351_v56 }
  0x55   :  { %v361_v16 = vrot.slane %v360_v9, 2  ;;  %v369_v17 = vadd.f32 %v368_v10, %v367_v62  ;;  %v346_v18 = vadd.f32 %v345_v11, %v344_v0  ;;  %752 = vlog2.f32 %v328_v63 }
  0x56   :  { %v436_v27 = vsel %vm420_vm6, %v1028_v32, 0.0  ;;  %v437_v30 = vsel %vm421_vm7, %v1030_v33, 0.0  ;;  %v354_v21 = vrot.slane %v353_v15, 1  ;;  %754 = vlog2.f32 %v337_v28 }
  0x57   :  { %v362_v22 = vadd.f32 %v361_v16, %v360_v9  ;;  %v370_v13 = vrot.slane %v369_v17, 2  ;;  %v749_v31 = vpop.eup %748  ;;  %756 = vlog2.f32 %v346_v18  ;;  %v438_v24 = vsel %vm422_vm8, %v1032_v34, 0.0 }
  0x58   :  { %v439_v32 = vsel %vm423_vm9, %v1034_v35, 0.0  ;;  %v440_v33 = vsel %vm424_vm10, %v1036_v36, 0.0  ;;  %v355_v23 = vadd.f32 %v354_v21, %v353_v15  ;;  %v375_v29 = vmul.f32 0.6931472, %v749_v31 }
  0x59   :  { %v363_v25 = vrot.slane %v362_v22, 1  ;;  %v371_v26 = vadd.f32 %v370_v13, %v369_v17  ;;  %v751_v44 = vpop.eup %750  ;;  %v441_v34 = vsel %vm425_vm11, %v1038_v37, 0.0  ;;  %v442_v35 = vsel %vm426_vm12, %v1040_v38, 0.0 }
  0x5a   :  { %v443_v36 = vsel %vm427_vm13, %v1042_v39, 0.0  ;;  %v1254_v49 = vsel %vm428_vm14, %v1044_v40, 0.0  ;;  %v377_v51 = vmul.f32 0.6931472, %v751_v44  ;;  %758 = vlog2.f32 %v355_v23 }
  0x5b   :  { %v364_v45 = vadd.f32 %v363_v25, %v362_v22  ;;  %v372_v47 = vrot.slane %v371_v26, 1  ;;  %v753_v37 = vpop.eup %752  ;;  %v1260_v38 = vsel %vm429_vm15, %v1046_v41, 0.0  ;;  %v1266_v39 = vsel %vm430_vm2, %v1048_v42, 0.0 }
  0x5c   :  { %v448_v40 = vsel %vm114_vm1, %v1178_v5, 0.0  ;;  %v449_v61 = vsel %vm114_vm1, %v433_v2, 0.0  ;;  %v755_v48 = vpop.eup %754  ;;  %v379_v53 = vmul.f32 0.6931472, %v753_v37  ;;  %v1272_v55 = vadd.f32 %v375_v29, %v1084_v46 }
  0x5d   :  { %v373_v52 = vadd.f32 %v372_v47, %v371_v26  ;;  %760 = vlog2.f32 %v364_v45  ;;  %v757_v41 = vpop.eup %756  ;;  %v447_v60 = vsel %vm431_vm0, %v1050_v43, 0.0  ;;  %v450_v42 = vadd.f32 %v449_v61, %v448_v40 }
  0x5e   :  { %v457_v3 = vsel %vm114_vm1, %v434_v12, 0.0  ;;  %v458_v5 = vsel %vm114_vm1, %v435_v57, 0.0  ;;  %v381_v56 = vmul.f32 0.6931472, %v755_v48  ;;  %v1281_v58 = vadd.f32 %v377_v51, %v1086_v50 }
  0x5f   :  { %762 = vlog2.f32 %v373_v52  ;;  %v459_v62 = vadd.f32 %v458_v5, %v457_v3  ;;  %v383_v63 = vmul.f32 0.6931472, %v757_v41  ;;  %v451_v46 = vrot.slane %v450_v42, 4 }
  0x60   :  { %v466_v0 = vsel %vm114_vm1, %v436_v27, 0.0  ;;  %v467_v2 = vsel %vm114_vm1, %v437_v30, 0.0  ;;  %v759_v6 = vpop.eup %758  ;;  %v1286_v43 = vadd.f32 %v379_v53, %v1088_v54  ;;  %v475_v8 = vsel %vm114_vm1, %v438_v24, 0.0 }
  0x61   :  { %v460_v7 = vrot.slane %v459_v62, 4  ;;  %v468_v20 = vadd.f32 %v467_v2, %v466_v0  ;;  %v385_v9 = vmul.f32 0.6931472, %v759_v6  ;;  %v452_v10 = vadd.f32 %v451_v46, %v450_v42 }
  0x62   :  { %v476_v50 = vsel %vm114_vm1, %v439_v32, 0.0  ;;  %v484_v11 = vsel %vm114_vm1, %v440_v33, 0.0  ;;  %v485_v16 = vsel %vm114_vm1, %v441_v34, 0.0  ;;  %v1293_v17 = vadd.f32 %v381_v56, %v1090_v59 }
  0x63   :  { %v761_v12 = vpop.eup %760  ;;  %v461_v57 = vadd.f32 %v460_v7, %v459_v62  ;;  %v469_v28 = vrot.slane %v468_v20, 4  ;;  %v477_v15 = vadd.f32 %v476_v50, %v475_v8  ;;  %v1296_v54 = vadd.f32 %v383_v63, %v1100_v1  ;;  %v118_v50 = vld [vmem:[#allocation6 + $0x1] sm:$0x1] }
  0x64   :  { %v453_v18 = vrot.slane %v452_v10, 2  ;;  %v486_v27 = vadd.f32 %v485_v16, %v484_v11  ;;  %v493_v31 = vsel %vm114_vm1, %v442_v35, 0.0  ;;  %v387_v24 = vmul.f32 0.6931472, %v761_v12 }
  0x65   :  { %v763_v30 = vpop.eup %762  ;;  %v462_v21 = vrot.slane %v461_v57, 2  ;;  %v470_v22 = vadd.f32 %v469_v28, %v468_v20  ;;  %v478_v13 = vrot.slane %v477_v15, 4  ;;  %v1300_v32 = vadd.f32 %v385_v9, %v1104_v4  ;;  %v120_v28 = vld [vmem:[#allocation6 + $0x3] sm:$0x1] }
  0x66   :  { %v454_v33 = vadd.f32 %v453_v18, %v452_v10  ;;  %v487_v23 = vrot.slane %v486_v27, 4  ;;  %v494_v1 = vsel %vm114_vm1, %v443_v36, 0.0  ;;  %v389_v29 = vmul.f32 0.6931472, %v763_v30  ;;  %v117_v10 = vld [vmem:[#allocation6] sm:$0x1] }
  0x67   :  { %v463_v25 = vadd.f32 %v462_v21, %v461_v57  ;;  %v471_v59 = vrot.slane %v470_v22, 2  ;;  %v479_v26 = vadd.f32 %v478_v13, %v477_v15  ;;  %v495_v45 = vadd.f32 %v494_v1, %v493_v31  ;;  %v119_v57 = vld [vmem:[#allocation6 + $0x2] sm:$0x1]  ;;  %v121_v15 = vld [vmem:[#allocation6 + $0x4] sm:$0x1] }
  0x68   :  { %v455_v44 = vrot.slane %v454_v33, 1  ;;  %v488_v34 = vadd.f32 %v487_v23, %v486_v27  ;;  %v502_v35 = vsel %vm114_vm1, %v1254_v49, 0.0  ;;  %v503_v48 = vsel %vm114_vm1, %v1260_v38, 0.0  ;;  %v528_v27 = vld [vmem:[#allocation8] sm:$0x1] }
  0x69   :  { %v464_v47 = vrot.slane %v463_v25, 1  ;;  %v472_v51 = vadd.f32 %v471_v59, %v470_v22  ;;  %v480_v37 = vrot.slane %v479_v26, 2  ;;  %v496_v61 = vrot.slane %v495_v45, 4  ;;  %v122_v30 = vld [vmem:[#allocation6 + $0x5] sm:$0x1] }
  0x6a   :  { %v456_v40 = vadd.f32 %v455_v44, %v454_v33  ;;  %v489_v4 = vrot.slane %v488_v34, 2  ;;  %v504_v36 = vadd.f32 %v503_v48, %v502_v35  ;;  %v511_v5 = vsel %vm114_vm1, %v1266_v39, 0.0  ;;  %v529_v31 = vld [vmem:[#allocation8 + $0x1] sm:$0x1]  ;;  %v530_v33 = vld [vmem:[#allocation8 + $0x2] sm:$0x1] }
  0x6b   :  { %v465_v52 = vadd.f32 %v464_v47, %v463_v25  ;;  %v473_v53 = vrot.slane %v472_v51, 1  ;;  %v481_v41 = vadd.f32 %v480_v37, %v479_v26  ;;  %v497_v3 = vadd.f32 %v496_v61, %v495_v45  ;;  %v531_v1 = vld [vmem:[#allocation8 + $0x3] sm:$0x1]  ;;  %v532_v44 = vld [vmem:[#allocation8 + $0x4] sm:$0x1] }
  0x6c   :  { %v490_v42 = vadd.f32 %v489_v4, %v488_v34  ;;  %v512_v56 = vsel %vm114_vm1, %v447_v60, 0.0  ;;  %v505_v49 = vrot.slane %v504_v36, 4  ;;  %v520_v6 = vsub.f32 %v1272_v55, %v456_v40  ;;  %v534_v40 = vld [vmem:[#allocation8 + $0x6] sm:$0x1] }
  0x6d   :  { %v474_v62 = vadd.f32 %v473_v53, %v472_v51  ;;  %v482_v63 = vrot.slane %v481_v41, 1  ;;  %v513_v46 = vadd.f32 %v512_v56, %v511_v5  ;;  %v498_v2 = vrot.slane %v497_v3, 2  ;;  %v545_v53 = vld [vmem:[#allocation9 + $0x1] sm:$0x1]  ;;  %v535_v5 = vld [vmem:[#allocation8 + $0x7] sm:$0x1] }
  0x6e   :  { %v491_v0 = vrot.slane %v490_v42, 1  ;;  %v521_v38 = vsub.f32 %v1281_v58, %v465_v52  ;;  %v506_v20 = vadd.f32 %v505_v49, %v504_v36  ;;  %v609_v60 = vsel %vm114_vm1, %v520_v6, 0.0  ;;  %v544_v52 = vld [vmem:[#allocation9] sm:$0x1] }
  0x6f   :  { %v483_v7 = vadd.f32 %v482_v63, %v481_v41  ;;  %v514_v8 = vrot.slane %v513_v46, 4  ;;  %v522_v9 = vsub.f32 %v1286_v43, %v474_v62  ;;  %v499_v11 = vadd.f32 %v498_v2, %v497_v3  ;;  %v546_v41 = vld [vmem:[#allocation9 + $0x2] sm:$0x1]  ;;  %v547_v62 = vld [vmem:[#allocation9 + $0x3] sm:$0x1] }
  0x70   :  { %v492_v39 = vadd.f32 %v491_v0, %v490_v42  ;;  %v610_v12 = vsel %vm114_vm1, %v521_v38, 0.0  ;;  %v507_v16 = vrot.slane %v506_v20, 2  ;;  %v396_v43 = vadd.f32 %v387_v24, %v1112_v14  ;;  %v533_v24 = vld [vmem:[#allocation8 + $0x5] sm:$0x1]  ;;  %v549_v0 = vld [vmem:[#allocation9 + $0x5] sm:$0x1] }
  0x71   :  { %v515_v55 = vadd.f32 %v514_v8, %v513_v46  ;;  %v523_v58 = vsub.f32 %v1293_v17, %v483_v7  ;;  %v611_v18 = vadd.f32 %v610_v12, %v609_v60  ;;  %v500_v21 = vrot.slane %v499_v11, 1  ;;  %v123_v17 = vld [vmem:[#allocation6 + $0x6] sm:$0x1]  ;;  %v548_v46 = vld [vmem:[#allocation9 + $0x4] sm:$0x1] }
  0x72   :  { %v524_v22 = vsub.f32 %v1296_v54, %v492_v39  ;;  %v612_v13 = vsel %vm114_vm1, %v522_v9, 0.0  ;;  %v397_v23 = vadd.f32 %v389_v29, %v1118_v19  ;;  %v508_v25 = vadd.f32 %v507_v16, %v506_v20  ;;  %v124_v54 = vld [vmem:[#allocation6 + $0x7] sm:$0x1]  ;;  %v550_v38 = vld [vmem:[#allocation9 + $0x6] sm:$0x1] }
  0x73   :  { %v516_v59 = vrot.slane %v515_v55, 2  ;;  %v613_v26 = vadd.f32 %v612_v13, %v611_v18  ;;  %v501_v34 = vadd.f32 %v500_v21, %v499_v11  ;;  %v614_v45 = vsel %vm114_vm1, %v523_v58, 0.0  ;;  %v551_v11 = vld [vmem:[#allocation9 + $0x7] sm:$0x1] }
  0x74   :  { %v616_v14 = vsel %vm114_vm1, %v524_v22, 0.0  ;;  %v536_v47 = vmul.f32 %v528_v27, %v117_v10  ;;  %v509_v51 = vrot.slane %v508_v25, 1  ;;  %v537_v4 = vmul.f32 %v529_v31, %v118_v50 }
  0x75   :  { %v517_v37 = vadd.f32 %v516_v59, %v515_v55  ;;  %v615_v35 = vadd.f32 %v614_v45, %v613_v26  ;;  %v525_v19 = vsub.f32 %v1300_v32, %v501_v34  ;;  %v538_v29 = vmul.f32 %v530_v33, %v119_v57 }
  0x76   :  { %v539_v61 = vmul.f32 %v531_v1, %v120_v28  ;;  %v540_v48 = vmul.f32 %v532_v44, %v121_v15  ;;  %v510_v36 = vadd.f32 %v509_v51, %v508_v25  ;;  %v541_v56 = vmul.f32 %v533_v24, %v122_v30  ;;  %v608_v15 = vld [vmem:[#allocation12] sm:$0x1] }
  0x77   :  { %v518_v42 = vrot.slane %v517_v37, 1  ;;  %v617_v3 = vadd.f32 %v616_v14, %v615_v35  ;;  %v618_v63 = vsel %vm114_vm1, %v525_v19, 0.0  ;;  %v542_v49 = vmul.f32 %v534_v40, %v123_v17 }
  0x78   :  { %v526_v6 = vsub.f32 %v396_v43, %v510_v36  ;;  %v552_v7 = vsub.f32 %v536_v47, %v544_v52  ;;  %v543_v20 = vmul.f32 %v535_v5, %v124_v54  ;;  %v553_v8 = vsub.f32 %v537_v4, %v545_v53 }
  0x79   :  { %v519_v2 = vadd.f32 %v518_v42, %v517_v37  ;;  %v619_v32 = vadd.f32 %v618_v63, %v617_v3  ;;  %v554_v9 = vsub.f32 %v538_v29, %v546_v41  ;;  %v555_v10 = vsub.f32 %v539_v61, %v547_v62 }
  0x7a   :  { %v620_v39 = vsel %vm114_vm1, %v526_v6, 0.0  ;;  %v556_v60 = vsub.f32 %v540_v48, %v548_v46  ;;  %v557_v12 = vsub.f32 %v541_v56, %v549_v0  ;;  %v558_v28 = vsub.f32 %v542_v49, %v550_v38 }
  0x7b   :  { %v527_v50 = vsub.f32 %v397_v23, %v519_v2  ;;  %v621_v57 = vadd.f32 %v620_v39, %v619_v32  ;;  %v560_v55 = vand.u32 2147483647, %v552_v7  ;;  %v559_v18 = vsub.f32 %v543_v20, %v551_v11 }
  0x7c   :  { %v561_v27 = vand.u32 2147483647, %v553_v8  ;;  %v562_v30 = vand.u32 2147483647, %v554_v9  ;;  %v563_v43 = vand.u32 2147483647, %v555_v10 }
  0x7d   :  { %v622_v16 = vsel %vm114_vm1, %v527_v50, 0.0  ;;  %v564_v21 = vand.u32 2147483647, %v556_v60  ;;  %v565_v22 = vand.u32 2147483647, %v557_v12  ;;  %v576_v33 = vmul.f32 0.5, %v552_v7 }
  0x7e   :  { %v623_v58 = vadd.f32 %v622_v16, %v621_v57  ;;  %v566_v31 = vand.u32 2147483647, %v558_v28  ;;  %v577_v23 = vmul.f32 0.5, %v553_v8  ;;  %vm1332_vm0 = vcmp.lt.f32.partialorder %v560_v55, 1.0  ;;  %v627_v16 = vld [vmem:[#allocation13] sm:$0x1] }
  0x7f   :  { %v578_v59 = vmul.f32 0.5, %v554_v9  ;;  %v579_v26 = vmul.f32 0.5, %v555_v10  ;;  %v580_v1 = vmul.f32 0.5, %v556_v60  ;;  %vm1391_vm1 = vcmask 122880  }
  0x80   :  { %v624_v13 = vadd.f32 %v623_v58, %v608_v15  ;;  %v567_v44 = vand.u32 2147483647, %v559_v18  ;;  %vm1337_vm3 = vcmp.lt.f32.partialorder %v561_v27, 1.0  ;;  %v584_v34 = vmul.f32 %v576_v33, %v552_v7  ;;  %vm1402_vm8 = vmmov %vm1391_vm1 }
  0x81   :  { %v585_v45 = vmul.f32 %v577_v23, %v553_v8  ;;  %vm1341_vm4 = vcmp.lt.f32.partialorder %v562_v30, 1.0  ;;  %v581_v24 = vmul.f32 0.5, %v557_v12  ;;  %v586_v47 = vmul.f32 %v578_v59, %v554_v9  ;;  %vm1403_vm9 = vmmov %vm1391_vm1 }
  0x82   :  { %626 = vst.msk [vmem:[#allocation12] sm:$0x1] %vm1391_vm1, %v624_v13  ;;  %v587_v54 = vmul.f32 %v579_v26, %v555_v10  ;;  %vm1345_vm5 = vcmp.lt.f32.partialorder %v563_v43, 1.0  ;;  %v582_v37 = vmul.f32 0.5, %v558_v28  ;;  %v680_v35 = vadd.f32 -0.5, %v560_v55  ;;  %vm1404_vm10 = vmmov %vm1391_vm1 }
  0x83   :  { %655 = dma.vmem_to_hbm [thread:$0]  %s651_s4, 16, %s653_s25, [#allocation5]   ;;  %v681_v40 = vadd.f32 -0.5, %v561_v27  ;;  %v588_v4 = vmul.f32 %v580_v1, %v556_v60  ;;  %v682_v19 = vadd.f32 -0.5, %v562_v30  ;;  %v683_v29 = vadd.f32 -0.5, %v563_v43  ;;  %vm1405_vm12 = vmmov %vm1391_vm1 }
  0x84   :  { %v684_v61 = vadd.f32 -0.5, %v564_v21  ;;  %vm1349_vm6 = vcmp.lt.f32.partialorder %v564_v21, 1.0  ;;  %v583_v52 = vmul.f32 0.5, %v559_v18  ;;  %v600_v53 = vsel %vm1332_vm0, %v584_v34, %v680_v35  ;;  %vm1406_vm14 = vmmov %vm1391_vm1 }
  0x85   :  { %v601_v41 = vsel %vm1337_vm3, %v585_v45, %v681_v40  ;;  %v589_v36 = vmul.f32 %v581_v24, %v557_v12  ;;  %v685_v42 = vadd.f32 -0.5, %v565_v22  ;;  %v602_v3 = vsel %vm1341_vm4, %v586_v47, %v682_v19  ;;  %vm1407_vm15 = vmmov %vm1391_vm1 }
  0x86   :  { %v603_v5 = vsel %vm1345_vm5, %v587_v54, %v683_v29  ;;  %vm1361_vm7 = vcmp.lt.f32.partialorder %v565_v22, 1.0  ;;  %v590_v62 = vmul.f32 %v582_v37, %v558_v28  ;;  %v628_v63 = vsel %vm1402_vm8, %v600_v53, 0.0  ;;  %vm1408_vm2 = vmmov %vm1391_vm1 }
  0x87   :  { %v629_v49 = vsel %vm1403_vm9, %v601_v41, 0.0  ;;  %v686_v46 = vadd.f32 -0.5, %v566_v31  ;;  %v604_v0 = vsel %vm1349_vm6, %v588_v4, %v684_v61  ;;  %v631_v6 = vsel %vm1404_vm10, %v602_v3, 0.0  ;;  %vm1409_vm0 = vmmov %vm1391_vm1 }
  0x88   :  { %v630_v2 = vadd.f32 %v629_v49, %v628_v63  ;;  %vm574_vm11 = vcmp.lt.f32.partialorder %v566_v31, 1.0  ;;  %v633_v32 = vsel %vm1405_vm12, %v603_v5, 0.0  ;;  %v591_v38 = vmul.f32 %v583_v52, %v559_v18  ;;  %vm1410_vm1 = vmmov %vm1409_vm0 }
  0x89   :  { %v687_v7 = vadd.f32 -0.5, %v567_v44  ;;  %v605_v20 = vsel %vm1361_vm7, %v589_v36, %v685_v42  ;;  %vm575_vm13 = vcmp.lt.f32.partialorder %v567_v44, 1.0  ;;  %v635_v9 = vsel %vm1406_vm14, %v604_v0, 0.0 }
  0x8a   :  { %v632_v8 = vadd.f32 %v631_v6, %v630_v2  ;;  %v606_v10 = vsel %vm574_vm11, %v590_v62, %v686_v46  ;;  %v637_v39 = vsel %vm1407_vm15, %v605_v20, 0.0 }
  0x8b   :  { %v607_v11 = vsel %vm575_vm13, %v591_v38, %v687_v7  ;;  %v639_v12 = vsel %vm1408_vm2, %v606_v10, 0.0 }
  0x8c   :  { %v634_v50 = vadd.f32 %v633_v32, %v632_v8  ;;  %v641_v28 = vsel %vm1409_vm0, %v607_v11, 0.0 }
  0x8e   :  { %v636_v60 = vadd.f32 %v635_v9, %v634_v50 }
  0x90   :  { %v638_v57 = vadd.f32 %v637_v39, %v636_v60 }
  0x92   :  { %v640_v15 = vadd.f32 %v639_v12, %v638_v57 }
  0x94   :  { %v642_v55 = vadd.f32 %v641_v28, %v640_v15 }
  0x96   :  { %v643_v58 = vadd.f32 %v642_v55, %v627_v16 }
  0x98   :  { %644 = vst.msk [vmem:[#allocation13] sm:$0x1] %vm1410_vm1, %v643_v58 }
  0x99   :  { %666 = dma.vmem_to_hbm [thread:$0]  %s662_s26, 16, %s664_s29, [#allocation14]  }
  0x9a   :  { %938 = dma.done.wait [#allocation5], 16  }
  0x9b   :  { %939 = vsyncadd [#allocation5], 4294967280 }
  0x9c   :  { %940 = dma.done.wait [#allocation14], 16  }
  0x9d   :  { %941 = vsyncadd [#allocation14], 4294967280 }
  0x9e   :  { %675 = vsyncpa [#allocation4], 1 }
  0x9f   :  { %676 = vsyncpa [#allocation7], 1 }
  0xa0   :  { %677 = vsyncpa [#allocation10], 1 }
  0xa1   :  { %678 = vsyncpa [#allocation5], 1 }
  0xa2   :  { %679 = vsyncpa [#allocation14], 1 }

</bundles_post_ra>
